<compile_context>
chip_gen: v7x
topology: tpu7x:2x2x1
jax: 0.10.0
libtpu: 0.0.40
codegen_flags: <defaults>
</compile_context>

<pallas_src>
import functools

import jax
import jax.numpy as jnp
from jax.experimental import pallas as pl
from jax.experimental.pallas import tpu as pltpu

_LANE = 128
_SUBLANE = 8


def _round_up(x, m):
    return ((x + m - 1) // m) * m


def _policy_mlp_kernel(x_ref, w1_ref, b1_ref, w2_ref, b2_ref, *out_refs,
                       emit_logits):
    if emit_logits:
        logits_ref, logp_ref = out_refs
    else:
        (logp_ref,) = out_refs

    x = x_ref[...]                                       # (TB, obs) f32
    w1 = w1_ref[...]                                     # (obs, HID_P) f32/bf16
    x1 = x.astype(w1.dtype) if w1.dtype != x.dtype else x
    # Layer 1: Linear + ReLU (MXU matmul, f32 accumulate; bias/ReLU in f32).
    h = jnp.dot(x1, w1, preferred_element_type=jnp.float32)
    h = jnp.maximum(h + b1_ref[...], 0.0)                # (TB, HID_P) f32

    w2 = w2_ref[...]                                     # (HID_P, ACT_P)
    h2 = h.astype(w2.dtype) if w2.dtype != h.dtype else h
    # Layer 2: Linear -> logits.  Padded action lanes carry -inf via b2p,
    # so no in-kernel iota/where mask is needed.
    logits = jnp.dot(h2, w2, preferred_element_type=jnp.float32)
    logits = logits + b2_ref[...]                        # (TB, ACT_P)

    if emit_logits:
        logits_ref[...] = logits.astype(logits_ref.dtype)

    # Numerically-stable log-softmax; exp(-inf) = 0 keeps padded lanes exact.
    m = jnp.max(logits, axis=-1, keepdims=True)
    z = logits - m
    lse = jnp.log(jnp.sum(jnp.exp(z), axis=-1, keepdims=True))
    logp_ref[...] = (z - lse).astype(logp_ref.dtype)


def prepare_params(w1, b1, w2, b2, *, weights_dtype=jnp.float32):
    """Pad / lay out parameters once (cache the result across forward calls).

    weights_dtype=jnp.bfloat16 halves weight DMA/VMEM on v6e/v7x (f32
    accumulation is kept inside the kernel).  Biases stay f32.
    """
    obs_dim, hidden = w1.shape
    n_act = w2.shape[-1]
    b1 = jnp.reshape(b1, (1, hidden)).astype(jnp.float32)
    b2 = jnp.reshape(b2, (1, n_act)).astype(jnp.float32)

    hid_p = _round_up(max(hidden, _LANE), _LANE)
    act_p = _round_up(max(n_act, _LANE), _LANE)

    w1p = jnp.zeros((obs_dim, hid_p), weights_dtype).at[:, :hidden].set(
        w1.astype(weights_dtype))
    b1p = jnp.zeros((1, hid_p), jnp.float32).at[:, :hidden].set(b1)
    w2p = jnp.zeros((hid_p, act_p), weights_dtype).at[:hidden, :n_act].set(
        w2.astype(weights_dtype))
    # -inf on padded action lanes bakes the log-softmax mask into the bias.
    b2p = jnp.full((1, act_p), -jnp.inf, jnp.float32).at[:, :n_act].set(b2)

    return dict(w1p=w1p, b1p=b1p, w2p=w2p, b2p=b2p,
                obs_dim=obs_dim, hidden=hidden, n_act=n_act,
                hid_p=hid_p, act_p=act_p)


def policy_forward(state, params, *, block_b=512, return_logits=False,
                   logits_dtype=jnp.float32, unpad=True):
    """Fused policy MLP forward.

    state: (B, obs_dim) f32.  params: output of `prepare_params`.
    Returns logp (B, n_act) or (logits, logp) if return_logits.
    With unpad=False the padded (b_p, act_p) buffers are returned directly
    (padded action lanes hold -inf); callers slicing lazily avoid two small
    strided-copy launches per call.
    """
    B, obs_dim = state.shape
    assert obs_dim == params["obs_dim"]
    hid_p, act_p, n_act = params["hid_p"], params["act_p"], params["n_act"]

    # Even batch tiling: no mostly-padding last step; >=2 grid steps for
    # B >= 16 so the "parallel" axis can shard across both v7x TensorCores.
    n_steps = max(1, -(-B // block_b))
    if B >= 2 * _SUBLANE and n_steps < 2:
        n_steps = 2
    tb = _round_up(-(-B // n_steps), _SUBLANE)
    b_p = tb * n_steps

    xp = state
    if b_p != B:  # only materialize a padded copy when actually needed
        xp = jnp.zeros((b_p, obs_dim), state.dtype).at[:B, :].set(state)

    out_shape = [jax.ShapeDtypeStruct((b_p, act_p), jnp.float32)]      # logp
    out_specs = [pl.BlockSpec((tb, act_p), lambda i: (i, 0))]
    if return_logits:
        out_shape = [jax.ShapeDtypeStruct((b_p, act_p), logits_dtype)] + out_shape
        out_specs = [pl.BlockSpec((tb, act_p), lambda i: (i, 0))] + out_specs

    outs = pl.pallas_call(
        functools.partial(_policy_mlp_kernel, emit_logits=return_logits),
        out_shape=tuple(out_shape),
        grid=(n_steps,),
        in_specs=[
            pl.BlockSpec((tb, obs_dim), lambda i: (i, 0)),     # activations
            pl.BlockSpec((obs_dim, hid_p), lambda i: (0, 0)),  # VMEM-resident
            pl.BlockSpec((1, hid_p), lambda i: (0, 0)),
            pl.BlockSpec((hid_p, act_p), lambda i: (0, 0)),
            pl.BlockSpec((1, act_p), lambda i: (0, 0)),
        ],
        out_specs=tuple(out_specs),
        compiler_params=pltpu.CompilerParams(
            dimension_semantics=("parallel",),
            vmem_limit_bytes=32 * 1024 * 1024,
        ),
    )(xp, params["w1p"], params["b1p"], params["w2p"], params["b2p"])

    if unpad:
        outs = tuple(o[:B, :n_act] for o in outs)
    if return_logits:
        return outs[0], outs[1]
    return outs[0]


def init_params(key, obs_dim, hidden, n_act):
    """Deterministic PyTorch-Linear-style init: U(-1/sqrt(fan_in), 1/sqrt(fan_in))."""
    k1, k2, k3, k4 = jax.random.split(key, 4)
    s1 = 1.0 / jnp.sqrt(obs_dim)
    s2 = 1.0 / jnp.sqrt(hidden)
    w1 = jax.random.uniform(k1, (obs_dim, hidden), jnp.float32, -s1, s1)
    b1 = jax.random.uniform(k2, (1, hidden), jnp.float32, -s1, s1)
    w2 = jax.random.uniform(k3, (hidden, n_act), jnp.float32, -s2, s2)
    b2 = jax.random.uniform(k4, (1, n_act), jnp.float32, -s2, s2)
    return w1, b1, w2, b2


if __name__ == "__main__":
    key = jax.random.PRNGKey(0)
    k_state, k_params, k_state2 = jax.random.split(key, 3)

    B, OBS, HID, ACT = 8, 16, 32, 4
    state = jax.random.normal(k_state, (B, OBS), jnp.float32)
    w1, b1, w2, b2 = init_params(k_params, OBS, HID, ACT)

    def ref_fwd(s):
        h = jnp.maximum(s @ w1 + b1, 0.0)
        lg = h @ w2 + b2
        return lg, jax.nn.log_softmax(lg, axis=-1)

    # Pad parameters once (cached across forward calls).
    params_f32 = prepare_params(w1, b1, w2, b2)

    # 1) Default path: log-probs only (half the HBM writeback).
    logp = policy_forward(state, params_f32)
    # 2) Full path: logits + log-probs.
    logits, logp2 = policy_forward(state, params_f32, return_logits=True)
    jax.block_until_ready((logp, logits, logp2))

    lg_ref, lp_ref = ref_fwd(state)
    assert jnp.allclose(logp, lp_ref, atol=1e-5), "log-prob mismatch"
    assert jnp.allclose(logits, lg_ref, atol=1e-5), "logits mismatch"
    assert jnp.allclose(logp2, lp_ref, atol=1e-5), "log-prob (logits path) mismatch"

    # 3) Uneven batch exercises the even-tiling / batch-padding / multi-step grid path.
    B2 = 44
    state2 = jax.random.normal(k_state2, (B2, OBS), jnp.float32)
    logp_big = policy_forward(state2, params_f32)
    jax.block_until_ready(logp_big)
    _, lp_ref2 = ref_fwd(state2)
    assert jnp.allclose(logp_big, lp_ref2, atol=1e-5), "uneven-batch mismatch"

    # 4) bf16-weight path (v6e/v7x MXU-native); f32 accumulation & activations.
    params_bf16 = prepare_params(w1, b1, w2, b2, weights_dtype=jnp.bfloat16)
    logp_bf16 = policy_forward(state, params_bf16)
    jax.block_until_ready(logp_bf16)
    assert bool(jnp.all(jnp.isfinite(logp_bf16))), "bf16 path produced non-finite"
    assert jnp.allclose(logp_bf16, lp_ref, atol=1e-1), "bf16 path diverged"

    print("KERNEL_OK")
</pallas_src>

<mosaic_0001>
module attributes {stable_mosaic.version = 11 : i64} {
  func.func @_policy_mlp_kernel(%arg0: i32, %arg1: memref<8x16xf32, #tpu.memory_space<vmem>>, %arg2: memref<16x128xf32, #tpu.memory_space<vmem>>, %arg3: memref<1x128xf32, #tpu.memory_space<vmem>>, %arg4: memref<128x128xf32, #tpu.memory_space<vmem>>, %arg5: memref<1x128xf32, #tpu.memory_space<vmem>>, %arg6: memref<8x128xf32, #tpu.memory_space<vmem>>) attributes {dimension_semantics = [#tpu.dimension_semantics<parallel>], iteration_bounds = array<i64: 1>, scalar_prefetch = 0 : i64, scratch_operands = 0 : i64, tpu.core_type = #tpu.core_type<tc>, window_params = [{transform_indices = @transform_0, window_bounds = array<i64: 8, 16>}, {pipeline_mode = #tpu.pipeline_mode<synchronous>, transform_indices = @transform_1, window_bounds = array<i64: 16, 128>}, {pipeline_mode = #tpu.pipeline_mode<synchronous>, transform_indices = @transform_2, window_bounds = array<i64: 1, 128>}, {pipeline_mode = #tpu.pipeline_mode<synchronous>, transform_indices = @transform_3, window_bounds = array<i64: 128, 128>}, {pipeline_mode = #tpu.pipeline_mode<synchronous>, transform_indices = @transform_4, window_bounds = array<i64: 1, 128>}, {transform_indices = @transform_5, window_bounds = array<i64: 8, 128>}]} {
    %c0 = arith.constant 0 : index
    %c0_0 = arith.constant 0 : index
    %0 = vector.load %arg1[%c0, %c0_0] : memref<8x16xf32, #tpu.memory_space<vmem>>, vector<8x16xf32>
    %c0_1 = arith.constant 0 : index
    %c0_2 = arith.constant 0 : index
    %1 = vector.load %arg2[%c0_1, %c0_2] : memref<16x128xf32, #tpu.memory_space<vmem>>, vector<16x128xf32>
    %cst = arith.constant dense<0.000000e+00> : vector<8x128xf32>
    %2 = tpu.matmul %0, %1, %cst {dimension_numbers = #tpu.dot_dimension_numbers<[1], [0], [0], [1], [0, 0, 1, 1], [], []>} : vector<8x16xf32>, vector<16x128xf32>, vector<8x128xf32> -> vector<8x128xf32>
    %c0_3 = arith.constant 0 : index
    %c0_4 = arith.constant 0 : index
    %3 = vector.load %arg3[%c0_3, %c0_4] : memref<1x128xf32, #tpu.memory_space<vmem>>, vector<1x128xf32>
    %4 = vector.broadcast %3 : vector<1x128xf32> to vector<8x128xf32>
    %5 = arith.addf %2, %4 : vector<8x128xf32>
    %cst_5 = arith.constant 0.000000e+00 : f32
    %6 = vector.broadcast %cst_5 : f32 to vector<8x128xf32>
    %7 = arith.maximumf %5, %6 : vector<8x128xf32>
    %c0_6 = arith.constant 0 : index
    %c0_7 = arith.constant 0 : index
    %8 = vector.load %arg4[%c0_6, %c0_7] : memref<128x128xf32, #tpu.memory_space<vmem>>, vector<128x128xf32>
    %cst_8 = arith.constant dense<0.000000e+00> : vector<8x128xf32>
    %9 = tpu.matmul %7, %8, %cst_8 {dimension_numbers = #tpu.dot_dimension_numbers<[1], [0], [0], [1], [0, 0, 1, 1], [], []>} : vector<8x128xf32>, vector<128x128xf32>, vector<8x128xf32> -> vector<8x128xf32>
    %c0_9 = arith.constant 0 : index
    %c0_10 = arith.constant 0 : index
    %10 = vector.load %arg5[%c0_9, %c0_10] : memref<1x128xf32, #tpu.memory_space<vmem>>, vector<1x128xf32>
    %11 = vector.broadcast %10 : vector<1x128xf32> to vector<8x128xf32>
    %12 = arith.addf %9, %11 : vector<8x128xf32>
    %cst_11 = arith.constant dense<0xFF800000> : vector<8xf32>
    %13 = vector.multi_reduction <maximumf>, %12, %cst_11 [1] : vector<8x128xf32> to vector<8xf32>
    %14 = vector.shape_cast %13 : vector<8xf32> to vector<8x1xf32>
    %15 = vector.broadcast %14 : vector<8x1xf32> to vector<8x128xf32>
    %16 = arith.subf %12, %15 : vector<8x128xf32>
    %17 = math.exp %16 : vector<8x128xf32>
    %cst_12 = arith.constant dense<0.000000e+00> : vector<8xf32>
    %18 = vector.multi_reduction <add>, %17, %cst_12 [1] : vector<8x128xf32> to vector<8xf32>
    %19 = vector.shape_cast %18 : vector<8xf32> to vector<8x1xf32>
    %20 = math.log %19 : vector<8x1xf32>
    %21 = vector.broadcast %20 : vector<8x1xf32> to vector<8x128xf32>
    %22 = arith.subf %16, %21 : vector<8x128xf32>
    %c0_13 = arith.constant 0 : index
    %c0_14 = arith.constant 0 : index
    %23 = vector.load %arg6[%c0_13, %c0_14] : memref<8x128xf32, #tpu.memory_space<vmem>>, vector<8x128xf32>
    tpu.vector_store %arg6[%c0_13, %c0_14], %22 {strides = array<i32>} : memref<8x128xf32, #tpu.memory_space<vmem>>, vector<8x128xf32>,
    return
  }
  func.func @transform_0(%arg0: i32) -> (i32, i32) {
    %c0_i32 = arith.constant 0 : i32
    %c0_i32_0 = arith.constant 0 : i32
    return %arg0, %c0_i32 : i32, i32
  }
  func.func @transform_1(%arg0: i32) -> (i32, i32) {
    %c0_i32 = arith.constant 0 : i32
    %c0_i32_0 = arith.constant 0 : i32
    %c0_i32_1 = arith.constant 0 : i32
    return %c0_i32, %c0_i32_0 : i32, i32
  }
  func.func @transform_2(%arg0: i32) -> (i32, i32) {
    %c0_i32 = arith.constant 0 : i32
    %c0_i32_0 = arith.constant 0 : i32
    %c0_i32_1 = arith.constant 0 : i32
    return %c0_i32, %c0_i32_0 : i32, i32
  }
  func.func @transform_3(%arg0: i32) -> (i32, i32) {
    %c0_i32 = arith.constant 0 : i32
    %c0_i32_0 = arith.constant 0 : i32
    %c0_i32_1 = arith.constant 0 : i32
    return %c0_i32, %c0_i32_0 : i32, i32
  }
  func.func @transform_4(%arg0: i32) -> (i32, i32) {
    %c0_i32 = arith.constant 0 : i32
    %c0_i32_0 = arith.constant 0 : i32
    %c0_i32_1 = arith.constant 0 : i32
    return %c0_i32, %c0_i32_0 : i32, i32
  }
  func.func @transform_5(%arg0: i32) -> (i32, i32) {
    %c0_i32 = arith.constant 0 : i32
    %c0_i32_0 = arith.constant 0 : i32
    return %arg0, %c0_i32 : i32, i32
  }
}

</mosaic_0001>

<bundles_post_ra>
// kernel: tpu_custom_call.1
= control target key start
LH: loop header
LB: loop body
LE: loop exit
PB: predicated region body
PF: predicated region fallthrough
CT: control target
= control target key end

     0   :  { %10 = vsyncpa [#allocation3], 0  ;;  %s563_s0 = inlined_call_operand.hbm [shape: f32[8,16], index: 0, kind: input, shape index: {}]   ;;  %s564_s1 = inlined_call_operand.hbm [shape: f32[16,128], index: 1, kind: input, shape index: {}]   ;;  %s565_s2 = inlined_call_operand.vmem [shape: f32[1,128], index: 2, kind: input, shape index: {}]   ;;  %s566_s3 = inlined_call_operand.hbm [shape: f32[128,128], index: 3, kind: input, shape index: {}]   ;;  %s567_s4 = inlined_call_operand.vmem [shape: f32[1,128], index: 4, kind: input, shape index: {}]   ;;  %s568_s5 = inlined_call_operand.hbm [shape: f32[8,128], index: 5, kind: output, shape index: {}]  }
   0x1   :  { %11 = vsyncpa [#allocation6], 0 }
   0x2   :  { %12 = vsyncpa [#allocation4], 0  ;;  %s464_s18 = smov [#allocation5]   ;;  %s370_s22 = scalar_lea.hbm %s564_s1, 256 }
   0x3   :  { %s28_s19 = sshll.u32 %s464_s18, 4  ;;  %p371_p0 = scmp.ne.s32.totalorder %s564_s1, %s370_s22  ;;  %s29_s19 = int_to_ptr.vmem [resolvable:$true] %s28_s19 }
   0x4   :  { %p374_p1 = scmp.lt.u32.totalorder %s370_s22, %s564_s1 }
   0x6   :  { %p376_p2 = pnand %p374_p1, %p371_p0 }
   0x8   :  { %379 = shalt.err (!%p376_p2)
}
   0x9   :  { %s380_s27 = scalar_lea.vmem %s29_s19, 256  ;;  %p385_p4 = scmp.lt.s32.totalorder %s29_s19, %s29_s19 }
   0xa   :  { %p381_p3 = scmp.ne.s32.totalorder %s29_s19, %s380_s27  ;;  %p386_p5 = scmp.lt.s32.totalorder %s380_s27, %s380_s27 }
   0xc   :  { %p387_p6 = por %p386_p5, %p385_p4 }
   0xe   :  { %p388_p7 = pnand %p387_p6, %p381_p3 }
  0x10   :  { %391 = shalt.err (!%p388_p7)
}
  0x11   :  { %s465_s28 = smov 128   ;;  %s466_s29 = smov 8  }
  0x12   :  { %34 = dma.hbm_to_vmem [thread:$0]  %s564_s1, 256, %s29_s19, [#allocation6], %s465_s28, %s465_s28, %s466_s29  }
  0x13   :  { %s467_s7 = smov [#allocation2]   ;;  %s468_s9 = smov [#allocation7]  }
  0x14   :  { %s19_s8 = sshll.u32 %s467_s7, 4  ;;  %s42_s10 = sshll.u32 %s468_s9, 4  ;;  %s20_s8 = int_to_ptr.vmem [resolvable:$true] %s19_s8  ;;  %s43_s10 = int_to_ptr.vmem [resolvable:$true] %s42_s10 }
  0x15   :  { %s392_s13 = scalar_lea.hbm %s563_s0, 128 }
  0x16   :  { %p393_p8 = scmp.ne.s32.totalorder %s563_s0, %s392_s13  ;;  %p396_p9 = scmp.lt.u32.totalorder %s392_s13, %s563_s0 }
  0x18   :  { %p398_p10 = pnand %p396_p9, %p393_p8 }
  0x1a   :  { %401 = shalt.err (!%p398_p10)
}
  0x1b   :  { %s402_s1 = scalar_lea.vmem %s20_s8, 128  ;;  %p407_p12 = scmp.lt.s32.totalorder %s20_s8, %s20_s8 }
  0x1c   :  { %p403_p11 = scmp.ne.s32.totalorder %s20_s8, %s402_s1  ;;  %p408_p13 = scmp.lt.s32.totalorder %s402_s1, %s402_s1 }
  0x1e   :  { %p409_p0 = por %p408_p13, %p407_p12 }
  0x20   :  { %p410_p1 = pnand %p409_p0, %p403_p11 }
  0x22   :  { %413 = shalt.err (!%p410_p1)
}
  0x23   :  { %22 = dma.hbm_to_vmem [thread:$0]  %s563_s0, 128, %s20_s8, [#allocation3]  }
  0x24   :  { %s414_s22 = scalar_lea.hbm %s566_s3, 2048 }
  0x25   :  { %p415_p2 = scmp.ne.s32.totalorder %s566_s3, %s414_s22  ;;  %p418_p3 = scmp.lt.u32.totalorder %s414_s22, %s566_s3 }
  0x27   :  { %p420_p4 = pnand %p418_p3, %p415_p2 }
  0x29   :  { %423 = shalt.err (!%p420_p4)
}
  0x2a   :  { %s424_s27 = scalar_lea.vmem %s43_s10, 2048  ;;  %p429_p6 = scmp.lt.s32.totalorder %s43_s10, %s43_s10 }
  0x2b   :  { %p425_p5 = scmp.ne.s32.totalorder %s43_s10, %s424_s27  ;;  %p430_p7 = scmp.lt.s32.totalorder %s424_s27, %s424_s27 }
  0x2d   :  { %p431_p8 = por %p430_p7, %p429_p6 }
  0x2f   :  { %p432_p9 = pnand %p431_p8, %p425_p5 }
  0x31   :  { %435 = shalt.err (!%p432_p9)
}
  0x32   :  { %48 = dma.hbm_to_vmem [thread:$0]  %s566_s3, 2048, %s43_s10, [#allocation6], %s465_s28, %s465_s28, %s466_s29  }
  0x33   :  { %458 = dma.done.wait [#allocation3], 128  }
  0x34   :  { %459 = vsyncadd [#allocation3], 4294967168 }
  0x35   :  { %460 = dma.done.wait [#allocation6], 2304  }
  0x36   :  { %461 = vsyncadd [#allocation6], 4294964992  ;;  %v469_v0 = vmov 0.0|0.0   ;;  %vm470_vm0 = vmmov 0   ;;  %v471_v1 = vmov 0.0   ;;  %v61_v2 = vld [vmem:[#allocation5] sm:$0xff] }
  0x37   :  { %330 = vmatprep.subr.bf16.mxu0 %v469_v0  ;;  %292 = vmatprep.mubr.msk.f32.mxu0 %vm470_vm0, %v471_v1  ;;  %v62_v3 = vld [vmem:[#allocation5 + $0x8] sm:$0xff]  ;;  %v145_v5 = vld [vmem:[#allocation7] sm:$0xff]  ;;  %v146_v6 = vld [vmem:[#allocation7 + $0x8] sm:$0xff]  ;;  %vm70_vm1 = vcmask 130048  }
  0x38   :  { %333 = vmatprep.subr.bf16.mxu1 %v469_v0  ;;  %327 = vmatprep.mubr.msk.f32.mxu1 %vm470_vm0, %v471_v1  ;;  %v331_v4 = vpack.c.bf16 %v62_v3, %v61_v2  ;;  %v147_v7 = vld [vmem:[#allocation7 + $0x10] sm:$0xff]  ;;  %v334_v8 = vpack.c.bf16 %v146_v6, %v145_v5  ;;  %v148_v9 = vld [vmem:[#allocation7 + $0x18] sm:$0xff]  ;;  %v60_v10 = vld [vmem:[#allocation2] sm:$0xff] }
  0x39   :  { %v337_v11 = vpack.c.bf16 %v148_v9, %v147_v7  ;;  %v149_v12 = vld [vmem:[#allocation7 + $0x20] sm:$0xff]  ;;  %v150_v13 = vld [vmem:[#allocation7 + $0x28] sm:$0xff]  ;;  %v151_v15 = vld [vmem:[#allocation7 + $0x30] sm:$0xff] }
  0x3a   :  { %332 = vmatpush3.bf16.msra.mxu0 %v331_v4  ;;  %335 = vmatpush3.bf16.msra.mxu1 %v334_v8  ;;  %v340_v14 = vpack.c.bf16 %v150_v13, %v149_v12  ;;  %v152_v16 = vld [vmem:[#allocation7 + $0x38] sm:$0xff]  ;;  %v153_v18 = vld [vmem:[#allocation7 + $0x40] sm:$0xff]  ;;  %v154_v19 = vld [vmem:[#allocation7 + $0x48] sm:$0xff] }
  0x3b   :  { %336 = vmatprep.subr.bf16.mxu1 %v469_v0  ;;  %v343_v17 = vpack.c.bf16 %v152_v16, %v151_v15  ;;  %v346_v20 = vpack.c.bf16 %v154_v19, %v153_v18  ;;  %v155_v21 = vld [vmem:[#allocation7 + $0x50] sm:$0xff]  ;;  %v156_v22 = vld [vmem:[#allocation7 + $0x58] sm:$0xff]  ;;  %v157_v24 = vld [vmem:[#allocation7 + $0x60] sm:$0xff] }
  0x3c   :  { %v349_v23 = vpack.c.bf16 %v156_v22, %v155_v21  ;;  %v158_v25 = vld [vmem:[#allocation7 + $0x68] sm:$0xff]  ;;  %v159_v27 = vld [vmem:[#allocation7 + $0x70] sm:$0xff]  ;;  %v160_v28 = vld [vmem:[#allocation7 + $0x78] sm:$0xff] }
  0x3d   :  { %293 = vmatmul.mubr.msk.f32.vlgmr.msra.gmra.mrb[0].mxu0 %vm70_vm1, %v60_v10  ;;  %v352_v26 = vpack.c.bf16 %v158_v25, %v157_v24  ;;  %v355_v29 = vpack.c.bf16 %v160_v28, %v159_v27  ;;  %v265_v30 = vld [vmem:[%s565_s2] ss:$0 sm:$0xff]  ;;  %s472_s2 = smov [#allocation8]  }
  0x3e   :  { %338 = vmatpush3.bf16.msra.mxu1 %v337_v11  ;;  %v267_v35 = vld [vmem:[%s567_s4] ss:$0 sm:$0xff]  ;;  %s255_s7 = sshll.u32 %s472_s2, 4  ;;  %s256_s7 = int_to_ptr.vmem [resolvable:$true] %s255_s7 }
  0x3f   :  { %339 = vmatprep.subr.bf16.mxu1 %v469_v0  ;;  %s436_s4 = scalar_lea.vmem %s256_s7, 128  ;;  %p441_p11 = scmp.lt.s32.totalorder %s256_s7, %s256_s7 }
  0x40   :  { %p437_p10 = scmp.ne.s32.totalorder %s256_s7, %s436_s4  ;;  %p442_p12 = scmp.lt.s32.totalorder %s436_s4, %s436_s4 }
  0x42   :  { %341 = vmatpush3.bf16.msra.mxu1 %v340_v14  ;;  %p443_p13 = por %p442_p12, %p441_p11 }
  0x43   :  { %342 = vmatprep.subr.bf16.mxu1 %v469_v0 }
  0x44   :  { %p444_p0 = pnand %p443_p13, %p437_p10 }
  0x46   :  { %344 = vmatpush3.bf16.msra.mxu1 %v343_v17 }
  0x47   :  { %345 = vmatprep.subr.bf16.mxu1 %v469_v0 }
  0x4a   :  { %347 = vmatpush3.bf16.msra.mxu1 %v346_v20 }
  0x4b   :  { %348 = vmatprep.subr.bf16.mxu1 %v469_v0 }
  0x4e   :  { %350 = vmatpush3.bf16.msra.mxu1 %v349_v23 }
  0x4f   :  { %351 = vmatprep.subr.bf16.mxu1 %v469_v0 }
  0x52   :  { %353 = vmatpush3.bf16.msra.mxu1 %v352_v26 }
  0x53   :  { %354 = vmatprep.subr.bf16.mxu1 %v469_v0 }
  0x56   :  { %356 = vmatpush3.bf16.msra.mxu1 %v355_v29 }
 0x110   :  { %v140_v31 = vpop.f32.mrb[0].mxu0 }
 0x111   :  { %v141_v32 = vadd.f32 %v265_v30, %v140_v31  ;;  %v294_v33 = vpop.f32.mrb[1].mxu0 }
 0x113   :  { %v144_v34 = vmax.f32 %v141_v32, 0.0 }
 0x115   :  { %328 = vmatmul.mubr.f32.vlgmr.msra.gmra.mrb[0].mxu1 %v144_v34 }
 0x1e8   :  { %v234_v36 = vpop.f32.mrb[0].mxu1 }
 0x1e9   :  { %v235_v37 = vadd.f32 %v267_v35, %v234_v36  ;;  %v329_v38 = vpop.f32.mrb[1].mxu1 }
 0x1eb   :  { %238 = vmax.xlane.f32.xlu0 %v235_v37 }
 0x278   :  { %v239_v39 = vpop.xlane.xlu0 %238 }
 0x279   :  { %v240_v40 = vsub.f32 %v235_v37, %v239_v39 }
 0x27b   :  { %v241_v41 = vmul.f32 1.442695, %v240_v40 }
 0x27d   :  { %366 = vpow2.f32 %v241_v41 }
 0x287   :  { %v367_v42 = vpop.eup %366 }
 0x288   :  { %243 = vadd.xlane.f32.xlu0 %v367_v42 }
 0x315   :  { %v244_v43 = vpop.xlane.xlu0 %243 }
 0x316   :  { %368 = vlog2.f32 %v244_v43 }
 0x320   :  { %v369_v44 = vpop.eup %368 }
 0x321   :  { %v246_v45 = vmul.f32 0.6931472, %v369_v44 }
 0x323   :  { %v247_v46 = vsub.f32 %v240_v40, %v246_v45 }
 0x325   :  { %248 = vst [vmem:[#allocation8] sm:$0xff] %v247_v46 }
 0x326   :  { %447 = shalt.err (!%p444_p0)
}
 0x327   :  { %s448_s10 = scalar_lea.hbm %s568_s5, 128 }
 0x328   :  { %p449_p1 = scmp.ne.s32.totalorder %s568_s5, %s448_s10  ;;  %p452_p2 = scmp.lt.u32.totalorder %s448_s10, %s568_s5 }
 0x32a   :  { %p454_p3 = pnand %p452_p2, %p449_p1 }
 0x32c   :  { %457 = shalt.err (!%p454_p3)
}
 0x32d   :  { %258 = dma.vmem_to_hbm [thread:$0]  %s256_s7, 128, %s568_s5, [#allocation4]  }
 0x32e   :  { %462 = dma.done.wait [#allocation4], 128  }
 0x32f   :  { %463 = vsyncadd [#allocation4], 4294967168 }
 0x330   :  { %262 = vsyncpa [#allocation3], 1 }
 0x331   :  { %263 = vsyncpa [#allocation6], 1 }
 0x332   :  { %264 = vsyncpa [#allocation4], 1 }

</bundles_post_ra>
